<compile_context>
chip_gen: v7x
topology: tpu7x:2x2x1
jax: 0.10.0
libtpu: 0.0.40
codegen_flags: <defaults>
</compile_context>

<pallas_src>
import functools

import jax
import jax.numpy as jnp
from jax.experimental import pallas as pl
from jax.experimental.pallas import tpu as pltpu

INPUT_SIZE = 1
HIDDEN = 32
_T_CHUNK_MAX = 256                       # hard cap on time steps per grid step
_VMEM_BUDGET_BYTES = 20 * 1024 * 1024    # stay well under the 32 MiB scoped default (v7x-safe)


def _round_up(x, m):
    return ((x + m - 1) // m) * m


def _rnn_kernel(xw_ref, h0_ref, whh_t_ref, wout_ref, bout_ref,
                y_ref, hN_ref, hist_ref, *,
                t_total, t_chunk, num_chunks, unroll, batch, ragged):
    """One grid step == one time chunk of `t_chunk` recurrence steps.

    xw_ref   : (t_chunk, B, H)   precomputed x_t @ W_ih^T + b_ih + b_hh
    h0_ref   : (B, H)            initial hidden state
    whh_t_ref: (H, H)            W_hh^T
    wout_ref : (1, H)            out.weight as a row
    bout_ref : (1, 1)            out.bias
    y_ref    : (1, B, t_chunk)   per-chunk outputs, lane-dense in time
    hN_ref   : (B, H)            resident carry across chunks / final hidden
    hist_ref : (t_chunk, B, H)   VMEM scratch: hidden-state history of the chunk
    """
    c = pl.program_id(0)

    @pl.when(c == 0)
    def _():
        hN_ref[...] = h0_ref[...]

    h_init = hN_ref[...]          # (B, H): carried in vregs through the loop
    whh_t = whh_t_ref[...]        # loop-invariant, hoisted
    base = c * t_chunk

    # TODO(synk): stage W_hh^T in the MXU weight registers once per chunk via
    # pltpu.matmul_push_rhs / matmul_acc_lhs / matmul_pop to take the RHS feed
    # off the serial chain; kept on the portable jnp.dot path here pending
    # on-hardware validation of the explicit-MXU API.
    def run_chunk(masked):
        def step(t, h):
            # Minimal serial path: one (B,H)@(H,H) MXU op + one EUP tanh / step.
            pre = xw_ref[t] + jnp.dot(h, whh_t,
                                      preferred_element_type=jnp.float32)
            h_new = jnp.tanh(pre)
            if masked:  # only compiled into the tail chunk: freeze padded steps
                h_new = jnp.where(base + t < t_total, h_new, h)
            hist_ref[t] = h_new
            return h_new
        return jax.lax.fori_loop(0, t_chunk, step, h_init, unroll=unroll)

    if not ragged:
        hN_ref[...] = run_chunk(False)
    elif num_chunks == 1:
        hN_ref[...] = run_chunk(True)
    else:
        @pl.when(c < num_chunks - 1)
        def _():
            hN_ref[...] = run_chunk(False)

        @pl.when(c == num_chunks - 1)
        def _():
            hN_ref[...] = run_chunk(True)

    # Deferred output projection Linear(H, 1), once per chunk, lane-dense:
    # y[b, t] = sum_h hist[t, b, h] * w_out[h] + b_out, emitted as (B, t_chunk)
    # rows so the HBM writeback uses full-lane-width rows instead of B(=2)-lane
    # masked stores.
    wout = wout_ref[...]                       # (1, H)
    bias = bout_ref[0, 0]
    for b in range(batch):                     # tiny static loop over batch rows
        hs_b = hist_ref[:, b, :]               # (t_chunk, H)
        row = jax.lax.dot_general(             # (1,H) x (t_chunk,H)^T -> (1,t_chunk)
            wout, hs_b,
            dimension_numbers=(((1,), (1,)), ((), ())),
            preferred_element_type=jnp.float32)
        y_ref[:, pl.ds(b, 1), :] = (row + bias)[None].astype(y_ref.dtype)


def rnn_forward(x_btI, h_state, params):
    """x_btI: (B, T, INPUT_SIZE) float32 (batch_first, like the PyTorch module).
    h_state: None or (1, B, HIDDEN).
    Returns (outs (B, T, 1), h_state (1, B, HIDDEN))."""
    B, T, I = x_btI.shape
    H = HIDDEN
    assert I == INPUT_SIZE

    w_ih, w_hh, b_ih, b_hh, w_out, b_out = params

    if h_state is None:
        h0 = jnp.zeros((B, H), jnp.float32)
    else:
        h0 = h_state.reshape(B, H).astype(jnp.float32)

    # Hoist the K=1 input projection + both biases off the recurrent critical
    # path, in time-major form.
    # TODO(synk): for large B*T on v5e, compute this inside the kernel from raw
    # x (I=1 broadcast is free VPU filler) to avoid 32x HBM inflation of xw.
    xw = (jnp.einsum('bti,hi->tbh', x_btI.astype(jnp.float32),
                     w_ih.astype(jnp.float32))
          + (b_ih + b_hh).reshape(1, 1, H)).astype(jnp.float32)   # (T, B, H)

    # Balanced time-chunking: cap the chunk at _T_CHUNK_MAX and at a VMEM
    # budget (2 xw buffers + hist, sublane/lane padded) so large B still fits
    # v7x's smaller scoped VMEM, then split T as evenly as possible (multiple
    # of 8) so a ragged tail wastes at most 7 serial steps per chunk.
    bytes_per_step = _round_up(B, 8) * max(_round_up(H, 128), 128) * 4
    cap = max(8, (_VMEM_BUDGET_BYTES // (3 * bytes_per_step)) // 8 * 8)
    t_chunk_max = min(_T_CHUNK_MAX, cap)
    num_chunks = -(-T // t_chunk_max)
    t_chunk = _round_up(-(-T // num_chunks), 8)
    t_pad = num_chunks * t_chunk
    ragged = t_pad != T
    if ragged:
        xw = jnp.pad(xw, ((0, t_pad - T), (0, 0), (0, 0)))

    # Deep unroll so the LLO scheduler can hide MXU-pop / tanh FIFO latency and
    # slot hist stores / xw loads as free filler.
    unroll = max(u for u in (32, 16, 8, 4, 2, 1) if t_chunk % u == 0)

    whh_t = w_hh.T.astype(jnp.float32)                   # (H, H)
    wout_row = w_out.reshape(1, H).astype(jnp.float32)   # (1, H)
    bout = b_out.reshape(1, 1).astype(jnp.float32)       # (1, 1)

    kernel = functools.partial(_rnn_kernel, t_total=T, t_chunk=t_chunk,
                               num_chunks=num_chunks, unroll=unroll,
                               batch=B, ragged=ragged)

    y3, hN = pl.pallas_call(
        kernel,
        out_shape=(
            jax.ShapeDtypeStruct((num_chunks, B, t_chunk), jnp.float32),
            jax.ShapeDtypeStruct((B, H), jnp.float32),
        ),
        grid_spec=pltpu.PrefetchScalarGridSpec(
            num_scalar_prefetch=0,
            grid=(num_chunks,),
            in_specs=[
                pl.BlockSpec((t_chunk, B, H), lambda c: (c, 0, 0)),  # xw chunk
                pl.BlockSpec((B, H), lambda c: (0, 0)),              # h0
                pl.BlockSpec((H, H), lambda c: (0, 0)),              # W_hh^T
                pl.BlockSpec((1, H), lambda c: (0, 0)),              # out weight
                pl.BlockSpec((1, 1), lambda c: (0, 0)),              # out bias
            ],
            out_specs=[
                pl.BlockSpec((1, B, t_chunk), lambda c: (c, 0, 0)),  # y slab
                pl.BlockSpec((B, H), lambda c: (0, 0)),              # hidden carry
            ],
            scratch_shapes=[pltpu.VMEM((t_chunk, B, H), jnp.float32)],
        ),
        compiler_params=pltpu.CompilerParams(
            dimension_semantics=("arbitrary",)),   # recurrence is serial in time
    )(xw, h0, whh_t, wout_row, bout)

    # TODO(synk): for large-batch workloads on v7x, add a leading batch grid
    # axis marked "parallel" (with a per-half hidden carry) to use the 2nd TC.
    y_bt = jnp.transpose(y3, (1, 0, 2)).reshape(B, t_pad)[:, :T]   # (B, T)
    outs = y_bt[..., None]                                         # (B, T, 1)
    return outs, hN.reshape(1, B, H)


def init_params(key):
    """Deterministic init matching PyTorch shapes: uniform(-1/sqrt(H), 1/sqrt(H))."""
    H, I = HIDDEN, INPUT_SIZE
    k = 1.0 / jnp.sqrt(jnp.float32(H))
    ks = jax.random.split(key, 6)
    w_ih = jax.random.uniform(ks[0], (H, I), jnp.float32, -k, k)   # weight_ih_l0
    w_hh = jax.random.uniform(ks[1], (H, H), jnp.float32, -k, k)   # weight_hh_l0
    b_ih = jax.random.uniform(ks[2], (H,), jnp.float32, -k, k)     # bias_ih_l0
    b_hh = jax.random.uniform(ks[3], (H,), jnp.float32, -k, k)     # bias_hh_l0
    w_out = jax.random.uniform(ks[4], (1, H), jnp.float32, -k, k)  # out.weight
    b_out = jax.random.uniform(ks[5], (1,), jnp.float32, -k, k)    # out.bias
    return (w_ih, w_hh, b_ih, b_hh, w_out, b_out)


def _reference(x_btI, h_state, params):
    """Pure-JAX reference of the PyTorch forward (sanity check)."""
    w_ih, w_hh, b_ih, b_hh, w_out, b_out = params
    B, T, _ = x_btI.shape
    h = (jnp.zeros((B, HIDDEN), jnp.float32) if h_state is None
         else h_state.reshape(B, HIDDEN))
    outs = []
    for t in range(T):
        h = jnp.tanh(x_btI[:, t, :] @ w_ih.T + b_ih + h @ w_hh.T + b_hh)
        outs.append(h @ w_out.T + b_out)
    return jnp.stack(outs, axis=1), h.reshape(1, B, HIDDEN)


if __name__ == "__main__":
    key = jax.random.PRNGKey(0)
    kp, kx, kh, kx2 = jax.random.split(key, 4)

    params = init_params(kp)

    B, T = 2, 8
    x = jax.random.normal(kx, (B, T, INPUT_SIZE), jnp.float32)
    h_state = jax.random.normal(kh, (1, B, HIDDEN), jnp.float32)

    outs, h_new = rnn_forward(x, h_state, params)
    outs = jax.block_until_ready(outs)
    h_new = jax.block_until_ready(h_new)

    ref_outs, ref_h = _reference(x, h_state, params)
    assert outs.shape == (B, T, 1) and h_new.shape == (1, B, HIDDEN)
    assert jnp.allclose(outs, ref_outs, atol=1e-5, rtol=1e-5)
    assert jnp.allclose(h_new, ref_h, atol=1e-5, rtol=1e-5)

    # h_state=None path (PyTorch allows None initial hidden)
    outs0, h0 = rnn_forward(x, None, params)
    ref_outs0, ref_h0 = _reference(x, None, params)
    jax.block_until_ready(outs0)
    assert jnp.allclose(outs0, ref_outs0, atol=1e-5, rtol=1e-5)
    assert jnp.allclose(h0, ref_h0, atol=1e-5, rtol=1e-5)

    # ragged (masked tail) path: T not a multiple of 8
    T2 = 19
    x2 = jax.random.normal(kx2, (B, T2, INPUT_SIZE), jnp.float32)
    outs2, h2 = rnn_forward(x2, h_state, params)
    ref_outs2, ref_h2 = _reference(x2, h_state, params)
    jax.block_until_ready(outs2)
    assert jnp.allclose(outs2, ref_outs2, atol=1e-5, rtol=1e-5)
    assert jnp.allclose(h2, ref_h2, atol=1e-5, rtol=1e-5)

    print("KERNEL_OK")
</pallas_src>

<mosaic_0001>
module attributes {stable_mosaic.version = 11 : i64} {
  func.func @_rnn_kernel(%arg0: i32, %arg1: memref<8x2x32xf32, #tpu.memory_space<vmem>>, %arg2: memref<2x32xf32, #tpu.memory_space<vmem>>, %arg3: memref<32x32xf32, #tpu.memory_space<vmem>>, %arg4: memref<1x32xf32, #tpu.memory_space<vmem>>, %arg5: memref<1x1xf32, #tpu.memory_space<vmem>>, %arg6: memref<1x2x8xf32, #tpu.memory_space<vmem>>, %arg7: memref<2x32xf32, #tpu.memory_space<vmem>>, %arg8: memref<8x2x32xf32, #tpu.memory_space<vmem>>) attributes {dimension_semantics = [#tpu.dimension_semantics<arbitrary>], iteration_bounds = array<i64: 1>, scalar_prefetch = 0 : i64, scratch_operands = 1 : i64, tpu.core_type = #tpu.core_type<tc>, window_params = [{transform_indices = @transform_0, window_bounds = array<i64: 8, 2, 32>}, {pipeline_mode = #tpu.pipeline_mode<synchronous>, transform_indices = @transform_1, window_bounds = array<i64: 2, 32>}, {pipeline_mode = #tpu.pipeline_mode<synchronous>, transform_indices = @transform_2, window_bounds = array<i64: 32, 32>}, {pipeline_mode = #tpu.pipeline_mode<synchronous>, transform_indices = @transform_3, window_bounds = array<i64: 1, 32>}, {pipeline_mode = #tpu.pipeline_mode<synchronous>, transform_indices = @transform_4, window_bounds = array<i64: 1, 1>}, {transform_indices = @transform_5, window_bounds = array<i64: 1, 2, 8>}, {pipeline_mode = #tpu.pipeline_mode<synchronous>, transform_indices = @transform_6, window_bounds = array<i64: 2, 32>}]} {
    %c0_i32 = arith.constant 0 : i32
    %0 = arith.cmpi eq, %arg0, %c0_i32 : i32
    %1 = arith.extui %0 : i1 to i32
    %c0_i32_0 = arith.constant 0 : i32
    %2 = arith.cmpi ne, %1, %c0_i32_0 : i32
    scf.if %2 {
      %c0_63 = arith.constant 0 : index
      %c0_64 = arith.constant 0 : index
      %103 = vector.load %arg2[%c0_63, %c0_64] : memref<2x32xf32, #tpu.memory_space<vmem>>, vector<2x32xf32>
      %c0_65 = arith.constant 0 : index
      %c0_66 = arith.constant 0 : index
      %104 = vector.load %arg7[%c0_65, %c0_66] : memref<2x32xf32, #tpu.memory_space<vmem>>, vector<2x32xf32>
      tpu.vector_store %arg7[%c0_65, %c0_66], %103 {strides = array<i32>} : memref<2x32xf32, #tpu.memory_space<vmem>>, vector<2x32xf32>,
    } else {
    }
    %c0 = arith.constant 0 : index
    %c0_1 = arith.constant 0 : index
    %3 = vector.load %arg7[%c0, %c0_1] : memref<2x32xf32, #tpu.memory_space<vmem>>, vector<2x32xf32>
    %c0_2 = arith.constant 0 : index
    %c0_3 = arith.constant 0 : index
    %4 = vector.load %arg3[%c0_2, %c0_3] : memref<32x32xf32, #tpu.memory_space<vmem>>, vector<32x32xf32>
    %c0_i32_4 = arith.constant 0 : i32
    %5 = arith.index_cast %c0_i32_4 : i32 to index
    %c0_5 = arith.constant 0 : index
    %c0_6 = arith.constant 0 : index
    %6 = vector.load %arg1[%5, %c0_5, %c0_6] : memref<8x2x32xf32, #tpu.memory_space<vmem>>, vector<1x2x32xf32>
    %7 = vector.shape_cast %6 : vector<1x2x32xf32> to vector<2x32xf32>
    %cst = arith.constant dense<0.000000e+00> : vector<2x32xf32>
    %8 = tpu.matmul %3, %4, %cst {dimension_numbers = #tpu.dot_dimension_numbers<[1], [0], [0], [1], [0, 0, 1, 1], [], []>} : vector<2x32xf32>, vector<32x32xf32>, vector<2x32xf32> -> vector<2x32xf32>
    %9 = arith.addf %7, %8 : vector<2x32xf32>
    %10 = math.tanh %9 : vector<2x32xf32>
    %11 = arith.index_cast %c0_i32_4 : i32 to index
    %c0_7 = arith.constant 0 : index
    %c0_8 = arith.constant 0 : index
    %12 = vector.load %arg8[%11, %c0_7, %c0_8] : memref<8x2x32xf32, #tpu.memory_space<vmem>>, vector<1x2x32xf32>
    %13 = vector.shape_cast %12 : vector<1x2x32xf32> to vector<2x32xf32>
    %14 = vector.shape_cast %10 : vector<2x32xf32> to vector<1x2x32xf32>
    tpu.vector_store %arg8[%11, %c0_7, %c0_8], %14 {strides = array<i32>} : memref<8x2x32xf32, #tpu.memory_space<vmem>>, vector<1x2x32xf32>,
    %c1_i32 = arith.constant 1 : i32
    %15 = arith.index_cast %c1_i32 : i32 to index
    %c0_9 = arith.constant 0 : index
    %c0_10 = arith.constant 0 : index
    %16 = vector.load %arg1[%15, %c0_9, %c0_10] : memref<8x2x32xf32, #tpu.memory_space<vmem>>, vector<1x2x32xf32>
    %17 = vector.shape_cast %16 : vector<1x2x32xf32> to vector<2x32xf32>
    %cst_11 = arith.constant dense<0.000000e+00> : vector<2x32xf32>
    %18 = tpu.matmul %10, %4, %cst_11 {dimension_numbers = #tpu.dot_dimension_numbers<[1], [0], [0], [1], [0, 0, 1, 1], [], []>} : vector<2x32xf32>, vector<32x32xf32>, vector<2x32xf32> -> vector<2x32xf32>
    %19 = arith.addf %17, %18 : vector<2x32xf32>
    %20 = math.tanh %19 : vector<2x32xf32>
    %21 = arith.index_cast %c1_i32 : i32 to index
    %c0_12 = arith.constant 0 : index
    %c0_13 = arith.constant 0 : index
    %22 = vector.load %arg8[%21, %c0_12, %c0_13] : memref<8x2x32xf32, #tpu.memory_space<vmem>>, vector<1x2x32xf32>
    %23 = vector.shape_cast %22 : vector<1x2x32xf32> to vector<2x32xf32>
    %24 = vector.shape_cast %20 : vector<2x32xf32> to vector<1x2x32xf32>
    tpu.vector_store %arg8[%21, %c0_12, %c0_13], %24 {strides = array<i32>} : memref<8x2x32xf32, #tpu.memory_space<vmem>>, vector<1x2x32xf32>,
    %c2_i32 = arith.constant 2 : i32
    %25 = arith.index_cast %c2_i32 : i32 to index
    %c0_14 = arith.constant 0 : index
    %c0_15 = arith.constant 0 : index
    %26 = vector.load %arg1[%25, %c0_14, %c0_15] : memref<8x2x32xf32, #tpu.memory_space<vmem>>, vector<1x2x32xf32>
    %27 = vector.shape_cast %26 : vector<1x2x32xf32> to vector<2x32xf32>
    %cst_16 = arith.constant dense<0.000000e+00> : vector<2x32xf32>
    %28 = tpu.matmul %20, %4, %cst_16 {dimension_numbers = #tpu.dot_dimension_numbers<[1], [0], [0], [1], [0, 0, 1, 1], [], []>} : vector<2x32xf32>, vector<32x32xf32>, vector<2x32xf32> -> vector<2x32xf32>
    %29 = arith.addf %27, %28 : vector<2x32xf32>
    %30 = math.tanh %29 : vector<2x32xf32>
    %31 = arith.index_cast %c2_i32 : i32 to index
    %c0_17 = arith.constant 0 : index
    %c0_18 = arith.constant 0 : index
    %32 = vector.load %arg8[%31, %c0_17, %c0_18] : memref<8x2x32xf32, #tpu.memory_space<vmem>>, vector<1x2x32xf32>
    %33 = vector.shape_cast %32 : vector<1x2x32xf32> to vector<2x32xf32>
    %34 = vector.shape_cast %30 : vector<2x32xf32> to vector<1x2x32xf32>
    tpu.vector_store %arg8[%31, %c0_17, %c0_18], %34 {strides = array<i32>} : memref<8x2x32xf32, #tpu.memory_space<vmem>>, vector<1x2x32xf32>,
    %c3_i32 = arith.constant 3 : i32
    %35 = arith.index_cast %c3_i32 : i32 to index
    %c0_19 = arith.constant 0 : index
    %c0_20 = arith.constant 0 : index
    %36 = vector.load %arg1[%35, %c0_19, %c0_20] : memref<8x2x32xf32, #tpu.memory_space<vmem>>, vector<1x2x32xf32>
    %37 = vector.shape_cast %36 : vector<1x2x32xf32> to vector<2x32xf32>
    %cst_21 = arith.constant dense<0.000000e+00> : vector<2x32xf32>
    %38 = tpu.matmul %30, %4, %cst_21 {dimension_numbers = #tpu.dot_dimension_numbers<[1], [0], [0], [1], [0, 0, 1, 1], [], []>} : vector<2x32xf32>, vector<32x32xf32>, vector<2x32xf32> -> vector<2x32xf32>
    %39 = arith.addf %37, %38 : vector<2x32xf32>
    %40 = math.tanh %39 : vector<2x32xf32>
    %41 = arith.index_cast %c3_i32 : i32 to index
    %c0_22 = arith.constant 0 : index
    %c0_23 = arith.constant 0 : index
    %42 = vector.load %arg8[%41, %c0_22, %c0_23] : memref<8x2x32xf32, #tpu.memory_space<vmem>>, vector<1x2x32xf32>
    %43 = vector.shape_cast %42 : vector<1x2x32xf32> to vector<2x32xf32>
    %44 = vector.shape_cast %40 : vector<2x32xf32> to vector<1x2x32xf32>
    tpu.vector_store %arg8[%41, %c0_22, %c0_23], %44 {strides = array<i32>} : memref<8x2x32xf32, #tpu.memory_space<vmem>>, vector<1x2x32xf32>,
    %c4_i32 = arith.constant 4 : i32
    %45 = arith.index_cast %c4_i32 : i32 to index
    %c0_24 = arith.constant 0 : index
    %c0_25 = arith.constant 0 : index
    %46 = vector.load %arg1[%45, %c0_24, %c0_25] : memref<8x2x32xf32, #tpu.memory_space<vmem>>, vector<1x2x32xf32>
    %47 = vector.shape_cast %46 : vector<1x2x32xf32> to vector<2x32xf32>
    %cst_26 = arith.constant dense<0.000000e+00> : vector<2x32xf32>
    %48 = tpu.matmul %40, %4, %cst_26 {dimension_numbers = #tpu.dot_dimension_numbers<[1], [0], [0], [1], [0, 0, 1, 1], [], []>} : vector<2x32xf32>, vector<32x32xf32>, vector<2x32xf32> -> vector<2x32xf32>
    %49 = arith.addf %47, %48 : vector<2x32xf32>
    %50 = math.tanh %49 : vector<2x32xf32>
    %51 = arith.index_cast %c4_i32 : i32 to index
    %c0_27 = arith.constant 0 : index
    %c0_28 = arith.constant 0 : index
    %52 = vector.load %arg8[%51, %c0_27, %c0_28] : memref<8x2x32xf32, #tpu.memory_space<vmem>>, vector<1x2x32xf32>
    %53 = vector.shape_cast %52 : vector<1x2x32xf32> to vector<2x32xf32>
    %54 = vector.shape_cast %50 : vector<2x32xf32> to vector<1x2x32xf32>
    tpu.vector_store %arg8[%51, %c0_27, %c0_28], %54 {strides = array<i32>} : memref<8x2x32xf32, #tpu.memory_space<vmem>>, vector<1x2x32xf32>,
    %c5_i32 = arith.constant 5 : i32
    %55 = arith.index_cast %c5_i32 : i32 to index
    %c0_29 = arith.constant 0 : index
    %c0_30 = arith.constant 0 : index
    %56 = vector.load %arg1[%55, %c0_29, %c0_30] : memref<8x2x32xf32, #tpu.memory_space<vmem>>, vector<1x2x32xf32>
    %57 = vector.shape_cast %56 : vector<1x2x32xf32> to vector<2x32xf32>
    %cst_31 = arith.constant dense<0.000000e+00> : vector<2x32xf32>
    %58 = tpu.matmul %50, %4, %cst_31 {dimension_numbers = #tpu.dot_dimension_numbers<[1], [0], [0], [1], [0, 0, 1, 1], [], []>} : vector<2x32xf32>, vector<32x32xf32>, vector<2x32xf32> -> vector<2x32xf32>
    %59 = arith.addf %57, %58 : vector<2x32xf32>
    %60 = math.tanh %59 : vector<2x32xf32>
    %61 = arith.index_cast %c5_i32 : i32 to index
    %c0_32 = arith.constant 0 : index
    %c0_33 = arith.constant 0 : index
    %62 = vector.load %arg8[%61, %c0_32, %c0_33] : memref<8x2x32xf32, #tpu.memory_space<vmem>>, vector<1x2x32xf32>
    %63 = vector.shape_cast %62 : vector<1x2x32xf32> to vector<2x32xf32>
    %64 = vector.shape_cast %60 : vector<2x32xf32> to vector<1x2x32xf32>
    tpu.vector_store %arg8[%61, %c0_32, %c0_33], %64 {strides = array<i32>} : memref<8x2x32xf32, #tpu.memory_space<vmem>>, vector<1x2x32xf32>,
    %c6_i32 = arith.constant 6 : i32
    %65 = arith.index_cast %c6_i32 : i32 to index
    %c0_34 = arith.constant 0 : index
    %c0_35 = arith.constant 0 : index
    %66 = vector.load %arg1[%65, %c0_34, %c0_35] : memref<8x2x32xf32, #tpu.memory_space<vmem>>, vector<1x2x32xf32>
    %67 = vector.shape_cast %66 : vector<1x2x32xf32> to vector<2x32xf32>
    %cst_36 = arith.constant dense<0.000000e+00> : vector<2x32xf32>
    %68 = tpu.matmul %60, %4, %cst_36 {dimension_numbers = #tpu.dot_dimension_numbers<[1], [0], [0], [1], [0, 0, 1, 1], [], []>} : vector<2x32xf32>, vector<32x32xf32>, vector<2x32xf32> -> vector<2x32xf32>
    %69 = arith.addf %67, %68 : vector<2x32xf32>
    %70 = math.tanh %69 : vector<2x32xf32>
    %71 = arith.index_cast %c6_i32 : i32 to index
    %c0_37 = arith.constant 0 : index
    %c0_38 = arith.constant 0 : index
    %72 = vector.load %arg8[%71, %c0_37, %c0_38] : memref<8x2x32xf32, #tpu.memory_space<vmem>>, vector<1x2x32xf32>
    %73 = vector.shape_cast %72 : vector<1x2x32xf32> to vector<2x32xf32>
    %74 = vector.shape_cast %70 : vector<2x32xf32> to vector<1x2x32xf32>
    tpu.vector_store %arg8[%71, %c0_37, %c0_38], %74 {strides = array<i32>} : memref<8x2x32xf32, #tpu.memory_space<vmem>>, vector<1x2x32xf32>,
    %c7_i32 = arith.constant 7 : i32
    %75 = arith.index_cast %c7_i32 : i32 to index
    %c0_39 = arith.constant 0 : index
    %c0_40 = arith.constant 0 : index
    %76 = vector.load %arg1[%75, %c0_39, %c0_40] : memref<8x2x32xf32, #tpu.memory_space<vmem>>, vector<1x2x32xf32>
    %77 = vector.shape_cast %76 : vector<1x2x32xf32> to vector<2x32xf32>
    %cst_41 = arith.constant dense<0.000000e+00> : vector<2x32xf32>
    %78 = tpu.matmul %70, %4, %cst_41 {dimension_numbers = #tpu.dot_dimension_numbers<[1], [0], [0], [1], [0, 0, 1, 1], [], []>} : vector<2x32xf32>, vector<32x32xf32>, vector<2x32xf32> -> vector<2x32xf32>
    %79 = arith.addf %77, %78 : vector<2x32xf32>
    %80 = math.tanh %79 : vector<2x32xf32>
    %81 = arith.index_cast %c7_i32 : i32 to index
    %c0_42 = arith.constant 0 : index
    %c0_43 = arith.constant 0 : index
    %82 = vector.load %arg8[%81, %c0_42, %c0_43] : memref<8x2x32xf32, #tpu.memory_space<vmem>>, vector<1x2x32xf32>
    %83 = vector.shape_cast %82 : vector<1x2x32xf32> to vector<2x32xf32>
    %84 = vector.shape_cast %80 : vector<2x32xf32> to vector<1x2x32xf32>
    tpu.vector_store %arg8[%81, %c0_42, %c0_43], %84 {strides = array<i32>} : memref<8x2x32xf32, #tpu.memory_space<vmem>>, vector<1x2x32xf32>,
    %c8_i32 = arith.constant 8 : i32
    %c0_44 = arith.constant 0 : index
    %c0_45 = arith.constant 0 : index
    %85 = vector.load %arg7[%c0_44, %c0_45] : memref<2x32xf32, #tpu.memory_space<vmem>>, vector<2x32xf32>
    tpu.vector_store %arg7[%c0_44, %c0_45], %80 {strides = array<i32>} : memref<2x32xf32, #tpu.memory_space<vmem>>, vector<2x32xf32>,
    %c0_46 = arith.constant 0 : index
    %c0_47 = arith.constant 0 : index
    %86 = vector.load %arg4[%c0_46, %c0_47] : memref<1x32xf32, #tpu.memory_space<vmem>>, vector<1x32xf32>
    %c0_48 = arith.constant 0 : index
    %c0_49 = arith.constant 0 : index
    %87 = vector.load %arg5[%c0_48, %c0_49] : memref<1x1xf32, #tpu.memory_space<vmem>>, vector<1x1xf32>
    %88 = vector.extract %87[0, 0] : f32 from vector<1x1xf32>
    %c0_50 = arith.constant 0 : index
    %c0_51 = arith.constant 0 : index
    %c0_52 = arith.constant 0 : index
    %89 = vector.load %arg8[%c0_50, %c0_51, %c0_52] : memref<8x2x32xf32, #tpu.memory_space<vmem>>, vector<8x1x32xf32>
    %90 = vector.shape_cast %89 : vector<8x1x32xf32> to vector<8x32xf32>
    %cst_53 = arith.constant dense<0.000000e+00> : vector<1x8xf32>
    %91 = tpu.matmul %86, %90, %cst_53 {dimension_numbers = #tpu.dot_dimension_numbers<[1], [1], [0], [0], [0, 0, 1, 0], [], []>} : vector<1x32xf32>, vector<8x32xf32>, vector<1x8xf32> -> vector<1x8xf32>
    %92 = vector.broadcast %88 : f32 to vector<1x8xf32>
    %93 = arith.addf %91, %92 : vector<1x8xf32>
    %94 = vector.shape_cast %93 : vector<1x8xf32> to vector<1x1x8xf32>
    %c0_54 = arith.constant 0 : index
    %c0_55 = arith.constant 0 : index
    %c0_56 = arith.constant 0 : index
    %95 = vector.load %arg6[%c0_54, %c0_55, %c0_56] : memref<1x2x8xf32, #tpu.memory_space<vmem>>, vector<1x1x8xf32>
    tpu.vector_store %arg6[%c0_54, %c0_55, %c0_56], %94 {strides = array<i32>} : memref<1x2x8xf32, #tpu.memory_space<vmem>>, vector<1x1x8xf32>,
    %c0_57 = arith.constant 0 : index
    %c1 = arith.constant 1 : index
    %c0_58 = arith.constant 0 : index
    %96 = vector.load %arg8[%c0_57, %c1, %c0_58] : memref<8x2x32xf32, #tpu.memory_space<vmem>>, vector<8x1x32xf32>
    %97 = vector.shape_cast %96 : vector<8x1x32xf32> to vector<8x32xf32>
    %cst_59 = arith.constant dense<0.000000e+00> : vector<1x8xf32>
    %98 = tpu.matmul %86, %97, %cst_59 {dimension_numbers = #tpu.dot_dimension_numbers<[1], [1], [0], [0], [0, 0, 1, 0], [], []>} : vector<1x32xf32>, vector<8x32xf32>, vector<1x8xf32> -> vector<1x8xf32>
    %99 = vector.broadcast %88 : f32 to vector<1x8xf32>
    %100 = arith.addf %98, %99 : vector<1x8xf32>
    %101 = vector.shape_cast %100 : vector<1x8xf32> to vector<1x1x8xf32>
    %c0_60 = arith.constant 0 : index
    %c1_61 = arith.constant 1 : index
    %c0_62 = arith.constant 0 : index
    %102 = vector.load %arg6[%c0_60, %c1_61, %c0_62] : memref<1x2x8xf32, #tpu.memory_space<vmem>>, vector<1x1x8xf32>
    tpu.vector_store %arg6[%c0_60, %c1_61, %c0_62], %101 {strides = array<i32>} : memref<1x2x8xf32, #tpu.memory_space<vmem>>, vector<1x1x8xf32>,
    return
  }
  func.func @transform_0(%arg0: i32) -> (i32, i32, i32) {
    %c0_i32 = arith.constant 0 : i32
    %c0_i32_0 = arith.constant 0 : i32
    %c0_i32_1 = arith.constant 0 : i32
    return %arg0, %c0_i32, %c0_i32_0 : i32, i32, i32
  }
  func.func @transform_1(%arg0: i32) -> (i32, i32) {
    %c0_i32 = arith.constant 0 : i32
    %c0_i32_0 = arith.constant 0 : i32
    %c0_i32_1 = arith.constant 0 : i32
    return %c0_i32, %c0_i32_0 : i32, i32
  }
  func.func @transform_2(%arg0: i32) -> (i32, i32) {
    %c0_i32 = arith.constant 0 : i32
    %c0_i32_0 = arith.constant 0 : i32
    %c0_i32_1 = arith.constant 0 : i32
    return %c0_i32, %c0_i32_0 : i32, i32
  }
  func.func @transform_3(%arg0: i32) -> (i32, i32) {
    %c0_i32 = arith.constant 0 : i32
    %c0_i32_0 = arith.constant 0 : i32
    %c0_i32_1 = arith.constant 0 : i32
    return %c0_i32, %c0_i32_0 : i32, i32
  }
  func.func @transform_4(%arg0: i32) -> (i32, i32) {
    %c0_i32 = arith.constant 0 : i32
    %c0_i32_0 = arith.constant 0 : i32
    %c0_i32_1 = arith.constant 0 : i32
    return %c0_i32, %c0_i32_0 : i32, i32
  }
  func.func @transform_5(%arg0: i32) -> (i32, i32, i32) {
    %c0_i32 = arith.constant 0 : i32
    %c0_i32_0 = arith.constant 0 : i32
    %c0_i32_1 = arith.constant 0 : i32
    return %arg0, %c0_i32, %c0_i32_0 : i32, i32, i32
  }
  func.func @transform_6(%arg0: i32) -> (i32, i32) {
    %c0_i32 = arith.constant 0 : i32
    %c0_i32_0 = arith.constant 0 : i32
    %c0_i32_1 = arith.constant 0 : i32
    return %c0_i32, %c0_i32_0 : i32, i32
  }
}

</mosaic_0001>

<bundles_post_ra>
// kernel: tpu_custom_call.1
= control target key start
LH: loop header
LB: loop body
LE: loop exit
PB: predicated region body
PF: predicated region fallthrough
CT: control target
= control target key end

     0   :  { %s1464_s0 = inlined_call_operand.hbm [shape: f32[8,2,32], index: 0, kind: input, shape index: {}]   ;;  %s1465_s1 = inlined_call_operand.vmem [shape: f32[2,32], index: 1, kind: input, shape index: {}]   ;;  %s1466_s2 = inlined_call_operand.hbm [shape: f32[32,32], index: 2, kind: input, shape index: {}]   ;;  %s1467_s3 = inlined_call_operand.vmem [shape: f32[1,32], index: 3, kind: input, shape index: {}]   ;;  %s1468_s4 = inlined_call_operand.<no memory space> [shape: f32[1,1], index: 4, kind: input, shape index: {}]   ;;  %s1469_s5 = inlined_call_operand.hbm [shape: f32[1,2,8], index: 5, kind: output, shape index: {0}]   ;;  %s1470_s6 = inlined_call_operand.hbm [shape: f32[2,32], index: 6, kind: output, shape index: {1}]  }
   0x1   :  { %v12_v0 = vstv %s1468_s4 }
   0x2   :  { %13 = vst [vmem:[#allocation3] sm:$0x1] %v12_v0 }
   0x3   :  { %14 = vsyncpa [#allocation5], 0 }
   0x4   :  { %15 = vsyncpa [#allocation8], 0 }
   0x5   :  { %16 = vsyncpa [#allocation6], 0 }
   0x6   :  { %17 = vsyncpa [#allocation11], 0  ;;  %s1277_s23 = smov [#allocation4]   ;;  %s1181_s27 = scalar_lea.hbm %s1464_s0, 256 }
   0x7   :  { %s23_s24 = sshll.u32 %s1277_s23, 4  ;;  %p1182_p0 = scmp.ne.s32.totalorder %s1464_s0, %s1181_s27  ;;  %s24_s24 = int_to_ptr.vmem [resolvable:$true] %s23_s24 }
   0x8   :  { %p1185_p1 = scmp.lt.u32.totalorder %s1181_s27, %s1464_s0 }
   0xa   :  { %p1187_p2 = pnand %p1185_p1, %p1182_p0 }
   0xc   :  { %1190 = shalt.err (!%p1187_p2)
}
   0xd   :  { %s1191_s4 = scalar_lea.vmem %s24_s24, 256  ;;  %p1196_p4 = scmp.lt.s32.totalorder %s24_s24, %s24_s24 }
   0xe   :  { %p1192_p3 = scmp.ne.s32.totalorder %s24_s24, %s1191_s4  ;;  %p1197_p5 = scmp.lt.s32.totalorder %s1191_s4, %s1191_s4 }
  0x10   :  { %p1198_p6 = por %p1197_p5, %p1196_p4 }
  0x12   :  { %p1199_p7 = pnand %p1198_p6, %p1192_p3 }
  0x14   :  { %1202 = shalt.err (!%p1199_p7)
}
  0x15   :  { %s1278_s8 = smov 32   ;;  %s1279_s9 = smov 2  }
  0x16   :  { %29 = dma.hbm_to_vmem [thread:$0]  %s1464_s0, 256, %s24_s24, [#allocation5], %s1278_s8, %s1278_s8, %s1279_s9  }
  0x17   :  { %s1280_s12 = smov [#allocation7]   ;;  %s1203_s16 = scalar_lea.hbm %s1466_s2, 512 }
  0x18   :  { %s37_s13 = sshll.u32 %s1280_s12, 4  ;;  %p1204_p8 = scmp.ne.s32.totalorder %s1466_s2, %s1203_s16  ;;  %s38_s13 = int_to_ptr.vmem [resolvable:$true] %s37_s13 }
  0x19   :  { %p1207_p9 = scmp.lt.u32.totalorder %s1203_s16, %s1466_s2 }
  0x1b   :  { %p1209_p10 = pnand %p1207_p9, %p1204_p8 }
  0x1d   :  { %1212 = shalt.err (!%p1209_p10)
}
  0x1e   :  { %s1213_s21 = scalar_lea.vmem %s38_s13, 512  ;;  %p1218_p12 = scmp.lt.s32.totalorder %s38_s13, %s38_s13 }
  0x1f   :  { %p1214_p11 = scmp.ne.s32.totalorder %s38_s13, %s1213_s21  ;;  %p1219_p13 = scmp.lt.s32.totalorder %s1213_s21, %s1213_s21 }
  0x21   :  { %p1220_p0 = por %p1219_p13, %p1218_p12 }
  0x23   :  { %p1221_p1 = pnand %p1220_p0, %p1214_p11 }
  0x25   :  { %1224 = shalt.err (!%p1221_p1)
}
  0x26   :  { %s1281_s0 = smov 128   ;;  %s1282_s22 = smov 8  }
  0x27   :  { %43 = dma.hbm_to_vmem [thread:$0]  %s1466_s2, 512, %s38_s13, [#allocation8], %s1281_s0, %s1281_s0, %s1282_s22  }
  0x28   :  { %1269 = dma.done.wait [#allocation5], 256  }
  0x29   :  { %1270 = vsyncadd [#allocation5], 4294967040 }
  0x2a   :  { %1271 = dma.done.wait [#allocation8], 512  }
  0x2b   :  { %1272 = vsyncadd [#allocation8], 4294966784  ;;  %v1283_v1 = vmov 0.0|0.0   ;;  %vm1284_vm0 = vmmov 0   ;;  %v1285_v2 = vmov 0.0   ;;  %vm59_vm1 = vcmask 254976  }
  0x2c   :  { %1104 = vmatprep.subr.bf16.mxu0 %v1283_v1  ;;  %1014 = vmatprep.mubr.msk.f32.mxu0 %vm1284_vm0, %v1285_v2  ;;  %v62_v3 = vld [vmem:[#allocation7] sm:$0xff]  ;;  %v63_v4 = vld [vmem:[#allocation7 + $0x8] sm:$0xff]  ;;  %v64_v5 = vld [vmem:[#allocation7 + $0x10] sm:$0xff]  ;;  %vm67_vm2 = vcmask 261120   ;;  %vm720_vm3 = vcmask 1041409   ;;  %vm723_vm4 = vcmask 1042434  }
  0x2d   :  { %1110 = vmatprep.subr.bf16.mxu1 %v1283_v1  ;;  %1025 = vmatprep.mubr.msk.f32.mxu1 %vm1284_vm0, %v1285_v2  ;;  %v1356_v6 = vpack.c.bf16 %v63_v4, %v62_v3  ;;  %v65_v7 = vld [vmem:[#allocation7 + $0x18] sm:$0xff]  ;;  %v66_v11 = vld [vmem:[#allocation4] sm:$0x3]  ;;  %v146_v16 = vld [vmem:[#allocation4 + $0x2] sm:$0x3]  ;;  %vm726_vm5 = vcmask 1043459  }
  0x2e   :  { %v58_v8 = vld [vmem:[%s1465_s1] sm:$0x3]  ;;  %v1363_v9 = vpack.c.bf16 %v65_v7, %v64_v5  ;;  %v225_v21 = vld [vmem:[#allocation4 + $0x4] sm:$0x3]  ;;  %v304_v26 = vld [vmem:[#allocation4 + $0x6] sm:$0x3] }
  0x2f   :  { %60 = vst.msk [vmem:[#allocation10] sm:$0x3] %vm59_vm1, %v58_v8  ;;  %1106 = vmatpush3.bf16.msra.mxu0 %v1356_v6  ;;  %1112 = vmatpush3.bf16.msra.mxu1 %v1356_v6  ;;  %v383_v31 = vld [vmem:[#allocation4 + $0x8] sm:$0x3]  ;;  %v462_v36 = vld [vmem:[#allocation4 + $0xa] sm:$0x3] }
  0x30   :  { %1107 = vmatprep.subr.bf16.mxu0 %v1283_v1  ;;  %1113 = vmatprep.subr.bf16.mxu1 %v1283_v1  ;;  %v541_v41 = vld [vmem:[#allocation4 + $0xc] sm:$0x3]  ;;  %v700_v46 = vld [vmem:[#allocation3] sm:$0x1]  ;;  %v620_v47 = vld [vmem:[#allocation4 + $0xe] sm:$0x3] }
  0x31   :  { %1152 = vpush %v700_v46  ;;  %vm729_vm6 = vcmask 1044484   ;;  %vm732_vm7 = vcmask 1045509   ;;  %vm735_vm8 = vcmask 1046534   ;;  %vm738_vm9 = vcmask 1047559   ;;  %s1286_s27 = smov [#allocation10]  }
  0x32   :  { %s936_s28 = sshll.u32 %s1286_s27, 4  ;;  %s937_s28 = int_to_ptr.vmem [resolvable:$true] %s936_s28 }
  0x33   :  { %1109 = vmatpush3.bf16.msra.mxu0 %v1363_v9  ;;  %1115 = vmatpush3.bf16.msra.mxu1 %v1363_v9  ;;  %s1225_s29 = scalar_lea.vmem %s937_s28, 32  ;;  %p1230_p3 = scmp.lt.s32.totalorder %s937_s28, %s937_s28 }
  0x34   :  { %1116 = vmatprep.subr.bf16.mxu0 %v1283_v1  ;;  %1122 = vmatprep.subr.bf16.mxu1 %v1283_v1  ;;  %p1226_p2 = scmp.ne.s32.totalorder %s937_s28, %s1225_s29  ;;  %p1231_p4 = scmp.lt.s32.totalorder %s1225_s29, %s1225_s29 }
  0x36   :  { %v61_v10 = vld [vmem:[#allocation10] sm:$0x3]  ;;  %p1232_p5 = por %p1231_p4, %p1230_p3 }
  0x37   :  { %1015 = vmatmul.mubr.msk.f32.vlgmr.msra.gmra.mrb[0].mxu0 %vm67_vm2, %v61_v10 }
  0x38   :  { %1118 = vmatpush3.bf16.msra.mxu0 %v1356_v6  ;;  %1036 = vmatprep.mubr.msk.f32.mxu0 %vm1284_vm0, %v1285_v2  ;;  %p1233_p6 = pnand %p1232_p5, %p1226_p2 }
  0x39   :  { %1119 = vmatprep.subr.bf16.mxu0 %v1283_v1 }
  0x3c   :  { %1121 = vmatpush3.bf16.msra.mxu0 %v1363_v9 }
  0x3d   :  { %1128 = vmatprep.subr.bf16.mxu0 %v1283_v1 }
 0x10a   :  { %v137_v12 = vpop.f32.mrb[0].mxu0 }
 0x10b   :  { %v141_v13 = vadd.f32 %v137_v12, %v66_v11  ;;  %v1016_v14 = vpop.f32.mrb[1].mxu0 }
 0x10d   :  { %1165 = vtanh.f32 %v141_v13 }
 0x117   :  { %v1166_v15 = vpop.eup %1165 }
 0x118   :  { %144 = vst.msk [vmem:[#allocation2] sm:$0x3] %vm59_vm1, %v1166_v15  ;;  %1026 = vmatmul.mubr.msk.f32.vlgmr.msra.gmra.mrb[0].mxu1 %vm67_vm2, %v1166_v15 }
 0x119   :  { %1124 = vmatpush3.bf16.msra.mxu1 %v1356_v6  ;;  %1047 = vmatprep.mubr.msk.f32.mxu1 %vm1284_vm0, %v1285_v2 }
 0x11a   :  { %1125 = vmatprep.subr.bf16.mxu1 %v1283_v1 }
 0x11d   :  { %1127 = vmatpush3.bf16.msra.mxu1 %v1363_v9 }
 0x11e   :  { %1134 = vmatprep.subr.bf16.mxu1 %v1283_v1 }
 0x11f   :  { %v702_v57 = vld [vmem:[#allocation2] sm:$0x1]  ;;  %v817_v63 = vld [vmem:[#allocation2 + $0x1] sm:$0x1] }
 0x1eb   :  { %v216_v17 = vpop.f32.mrb[0].mxu1 }
 0x1ec   :  { %v220_v18 = vadd.f32 %v216_v17, %v146_v16  ;;  %v1027_v19 = vpop.f32.mrb[1].mxu1 }
 0x1ee   :  { %1167 = vtanh.f32 %v220_v18 }
 0x1f8   :  { %v1168_v20 = vpop.eup %1167 }
 0x1f9   :  { %223 = vst.msk [vmem:[#allocation2 + $0x2] sm:$0x3] %vm59_vm1, %v1168_v20  ;;  %1037 = vmatmul.mubr.msk.f32.vlgmr.msra.gmra.mrb[2].mxu0 %vm67_vm2, %v1168_v20 }
 0x1fa   :  { %1130 = vmatpush3.bf16.msra.mxu0 %v1356_v6  ;;  %1058 = vmatprep.mubr.msk.f32.mxu0 %vm1284_vm0, %v1285_v2 }
 0x1fb   :  { %1131 = vmatprep.subr.bf16.mxu0 %v1283_v1 }
 0x1fe   :  { %1133 = vmatpush3.bf16.msra.mxu0 %v1363_v9 }
 0x1ff   :  { %1140 = vmatprep.subr.bf16.mxu0 %v1283_v1 }
 0x200   :  { %v703_v51 = vld [vmem:[#allocation2 + $0x2] sm:$0x1]  ;;  %v818_v52 = vld [vmem:[#allocation2 + $0x3] sm:$0x1] }
 0x201   :  { %v719_v54 = vrot.slane %v703_v51, 7  ;;  %v833_v60 = vrot.slane %v818_v52, 7 }
 0x203   :  { %v721_v5 = vsel %vm720_vm3, %v719_v54, %v702_v57  ;;  %v834_v10 = vsel %vm720_vm3, %v833_v60, %v817_v63 }
 0x2cc   :  { %v295_v22 = vpop.f32.mrb[2].mxu0 }
 0x2cd   :  { %v299_v23 = vadd.f32 %v295_v22, %v225_v21  ;;  %v1038_v24 = vpop.f32.mrb[3].mxu0 }
 0x2cf   :  { %1169 = vtanh.f32 %v299_v23 }
 0x2d9   :  { %v1170_v25 = vpop.eup %1169 }
 0x2da   :  { %302 = vst.msk [vmem:[#allocation2 + $0x4] sm:$0x3] %vm59_vm1, %v1170_v25  ;;  %1048 = vmatmul.mubr.msk.f32.vlgmr.msra.gmra.mrb[2].mxu1 %vm67_vm2, %v1170_v25 }
 0x2db   :  { %1136 = vmatpush3.bf16.msra.mxu1 %v1356_v6  ;;  %1069 = vmatprep.mubr.msk.f32.mxu1 %vm1284_vm0, %v1285_v2 }
 0x2dc   :  { %1137 = vmatprep.subr.bf16.mxu1 %v1283_v1 }
 0x2df   :  { %1139 = vmatpush3.bf16.msra.mxu1 %v1363_v9 }
 0x2e0   :  { %1146 = vmatprep.subr.bf16.mxu1 %v1283_v1 }
 0x2e1   :  { %v704_v53 = vld [vmem:[#allocation2 + $0x4] sm:$0x1]  ;;  %v819_v55 = vld [vmem:[#allocation2 + $0x5] sm:$0x1] }
 0x2e2   :  { %v722_v62 = vrot.slane %v704_v53, 6  ;;  %v835_v3 = vrot.slane %v819_v55, 6 }
 0x2e4   :  { %v724_v12 = vsel %vm723_vm4, %v722_v62, %v721_v5  ;;  %v836_v16 = vsel %vm723_vm4, %v835_v3, %v834_v10 }
 0x3ad   :  { %v374_v27 = vpop.f32.mrb[2].mxu1 }
 0x3ae   :  { %v378_v28 = vadd.f32 %v374_v27, %v304_v26  ;;  %v1049_v29 = vpop.f32.mrb[3].mxu1 }
 0x3b0   :  { %1171 = vtanh.f32 %v378_v28 }
 0x3ba   :  { %v1172_v30 = vpop.eup %1171 }
 0x3bb   :  { %381 = vst.msk [vmem:[#allocation2 + $0x6] sm:$0x3] %vm59_vm1, %v1172_v30  ;;  %1059 = vmatmul.mubr.msk.f32.vlgmr.msra.gmra.mrb[4].mxu0 %vm67_vm2, %v1172_v30 }
 0x3bc   :  { %1142 = vmatpush3.bf16.msra.mxu0 %v1356_v6  ;;  %1080 = vmatprep.mubr.msk.f32.mxu0 %vm1284_vm0, %v1285_v2 }
 0x3bd   :  { %1143 = vmatprep.subr.bf16.mxu0 %v1283_v1 }
 0x3c0   :  { %1145 = vmatpush3.bf16.msra.mxu0 %v1363_v9 }
 0x3c1   :  { %1094 = vmatprep.subr.mxu0 %v1285_v2 }
 0x3c2   :  { %v705_v58 = vld [vmem:[#allocation2 + $0x6] sm:$0x1]  ;;  %v820_v59 = vld [vmem:[#allocation2 + $0x7] sm:$0x1] }
 0x3c3   :  { %v837_v8 = vrot.slane %v820_v59, 5 }
 0x3c5   :  { %v838_v19 = vsel %vm726_vm5, %v837_v8, %v836_v16 }
 0x48e   :  { %v453_v32 = vpop.f32.mrb[4].mxu0 }
 0x48f   :  { %v457_v33 = vadd.f32 %v453_v32, %v383_v31  ;;  %v1060_v34 = vpop.f32.mrb[5].mxu0  ;;  %v699_v32 = vld [vmem:[%s1467_s3] sm:$0x1] }
 0x491   :  { %1173 = vtanh.f32 %v457_v33 }
 0x49b   :  { %v1174_v35 = vpop.eup %1173 }
 0x49c   :  { %460 = vst.msk [vmem:[#allocation2 + $0x8] sm:$0x3] %vm59_vm1, %v1174_v35  ;;  %1070 = vmatmul.mubr.msk.f32.vlgmr.msra.gmra.mrb[4].mxu1 %vm67_vm2, %v1174_v35 }
 0x49d   :  { %1148 = vmatpush3.bf16.msra.mxu1 %v1356_v6  ;;  %1091 = vmatprep.mubr.msk.f32.mxu1 %vm1284_vm0, %v1285_v2  ;;  %v725_v6 = vrot.slane %v705_v58, 5 }
 0x49e   :  { %1149 = vmatprep.subr.bf16.mxu1 %v1283_v1 }
 0x49f   :  { %v727_v18 = vsel %vm726_vm5, %v725_v6, %v724_v12 }
 0x4a1   :  { %1151 = vmatpush3.bf16.msra.mxu1 %v1363_v9 }
 0x4a2   :  { %1099 = vmatprep.subr.mxu1 %v1285_v2 }
 0x4a3   :  { %v706_v61 = vld [vmem:[#allocation2 + $0x8] sm:$0x1]  ;;  %v821_v0 = vld [vmem:[#allocation2 + $0x9] sm:$0x1] }
 0x4a4   :  { %v728_v9 = vrot.slane %v706_v61, 4  ;;  %v839_v11 = vrot.slane %v821_v0, 4 }
 0x4a6   :  { %v730_v21 = vsel %vm729_vm6, %v728_v9, %v727_v18  ;;  %v840_v23 = vsel %vm729_vm6, %v839_v11, %v838_v19 }
 0x56f   :  { %v532_v37 = vpop.f32.mrb[4].mxu1 }
 0x570   :  { %v536_v38 = vadd.f32 %v532_v37, %v462_v36  ;;  %v1071_v39 = vpop.f32.mrb[5].mxu1 }
 0x572   :  { %1175 = vtanh.f32 %v536_v38 }
 0x57c   :  { %v1176_v40 = vpop.eup %1175 }
 0x57d   :  { %539 = vst.msk [vmem:[#allocation2 + $0xa] sm:$0x3] %vm59_vm1, %v1176_v40  ;;  %1081 = vmatmul.mubr.msk.f32.vlgmr.msra.gmra.mrb[6].mxu0 %vm67_vm2, %v1176_v40 }
 0x57e   :  { %1096 = vmatprep.mubr.msk.f32.mxu0 %vm1284_vm0, %v1285_v2 }
 0x584   :  { %v707_v1 = vld [vmem:[#allocation2 + $0xa] sm:$0x1] }
 0x585   :  { %v731_v13 = vrot.slane %v707_v1, 3 }
 0x587   :  { %v733_v24 = vsel %vm732_vm7, %v731_v13, %v730_v21 }
 0x650   :  { %v611_v42 = vpop.f32.mrb[6].mxu0 }
 0x651   :  { %v615_v43 = vadd.f32 %v611_v42, %v541_v41  ;;  %v1082_v44 = vpop.f32.mrb[7].mxu0 }
 0x653   :  { %1177 = vtanh.f32 %v615_v43 }
 0x65d   :  { %v1178_v45 = vpop.eup %1177 }
 0x65e   :  { %618 = vst.msk [vmem:[#allocation2 + $0xc] sm:$0x3] %vm59_vm1, %v1178_v45  ;;  %1092 = vmatmul.mubr.msk.f32.vlgmr.msra.gmra.mrb[6].mxu1 %vm67_vm2, %v1178_v45 }
 0x65f   :  { %1101 = vmatprep.mubr.msk.f32.mxu1 %vm1284_vm0, %v1285_v2  ;;  %v822_v2 = vld [vmem:[#allocation2 + $0xb] sm:$0x1] }
 0x660   :  { %v841_v14 = vrot.slane %v822_v2, 3 }
 0x662   :  { %v842_v26 = vsel %vm732_vm7, %v841_v14, %v840_v23 }
 0x665   :  { %v708_v4 = vld [vmem:[#allocation2 + $0xc] sm:$0x1]  ;;  %v823_v7 = vld [vmem:[#allocation2 + $0xd] sm:$0x1] }
 0x666   :  { %v734_v15 = vrot.slane %v708_v4, 2  ;;  %v843_v17 = vrot.slane %v823_v7, 2 }
 0x668   :  { %v736_v28 = vsel %vm735_vm8, %v734_v15, %v733_v24  ;;  %v844_v29 = vsel %vm735_vm8, %v843_v17, %v842_v26 }
 0x731   :  { %v690_v48 = vpop.f32.mrb[6].mxu1 }
 0x732   :  { %v694_v49 = vadd.f32 %v690_v48, %v620_v47  ;;  %v1093_v50 = vpop.f32.mrb[7].mxu1 }
 0x734   :  { %1179 = vtanh.f32 %v694_v49 }
 0x73e   :  { %v1180_v56 = vpop.eup %1179 }
 0x73f   :  { %697 = vst.msk [vmem:[#allocation2 + $0xe] sm:$0x3] %vm59_vm1, %v1180_v56  ;;  %698 = vst.msk [vmem:[#allocation10] sm:$0x3] %vm59_vm1, %v1180_v56 }
 0x746   :  { %v709_v20 = vld [vmem:[#allocation2 + $0xe] sm:$0x1]  ;;  %v824_v22 = vld [vmem:[#allocation2 + $0xf] sm:$0x1] }
 0x747   :  { %v737_v25 = vrot.slane %v709_v20, 1  ;;  %v845_v27 = vrot.slane %v824_v22, 1 }
 0x749   :  { %v739_v30 = vsel %vm738_vm9, %v737_v25, %v736_v28  ;;  %v846_v31 = vsel %vm738_vm9, %v845_v27, %v844_v29 }
 0x74a   :  { %1095 = vmatpush3.xpose.msk.msra.mxu0 %vm67_vm2, %v739_v30  ;;  %1100 = vmatpush3.xpose.msk.msra.mxu1 %vm67_vm2, %v846_v31 }
 0x74d   :  { %1097 = vmatmul.mubr.msk.f32.vlgmr.msra.gmra.mrb[8].mxu0 %vm67_vm2, %v699_v32  ;;  %1102 = vmatmul.mubr.msk.f32.vlgmr.msra.gmra.mrb[8].mxu1 %vm67_vm2, %v699_v32 }
 0x74e   :  { %1236 = shalt.err (!%p1233_p6)
}
 0x74f   :  { %s1237_s4 = scalar_lea.hbm %s1470_s6, 32 }
 0x750   :  { %p1238_p7 = scmp.ne.s32.totalorder %s1470_s6, %s1237_s4  ;;  %p1241_p8 = scmp.lt.u32.totalorder %s1237_s4, %s1470_s6 }
 0x752   :  { %p1243_p9 = pnand %p1241_p8, %p1238_p7 }
 0x754   :  { %1246 = shalt.err (!%p1243_p9)
}
 0x755   :  { %939 = dma.vmem_to_hbm [thread:$0]  %s937_s28, 32, %s1470_s6, [#allocation11]   ;;  %vm815_vm10 = vcmask 57344  }
 0x756   :  { %s1153_s13 = spop %1152  ;;  %s1287_s14 = smov [#allocation9]  }
 0x757   :  { %v710_v33 = vstv %s1153_s13  ;;  %s926_s15 = sshll.u32 %s1287_s14, 4  ;;  %s927_s15 = int_to_ptr.vmem [resolvable:$true] %s926_s15 }
 0x758   :  { %s1247_s16 = scalar_lea.vmem %s927_s15, 32  ;;  %p1252_p11 = scmp.lt.s32.totalorder %s927_s15, %s927_s15 }
 0x759   :  { %p1248_p10 = scmp.ne.s32.totalorder %s927_s15, %s1247_s16  ;;  %p1253_p12 = scmp.lt.s32.totalorder %s1247_s16, %s1247_s16 }
 0x75b   :  { %p1254_p13 = por %p1253_p12, %p1252_p11 }
 0x75d   :  { %p1255_p0 = pnand %p1254_p13, %p1248_p10 }
 0x820   :  { %v811_v34 = vpop.f32.mrb[8].mxu0  ;;  %v915_v35 = vpop.f32.mrb[8].mxu1 }
 0x821   :  { %v812_v36 = vadd.f32 %v811_v34, %v710_v33  ;;  %v916_v37 = vadd.f32 %v915_v35, %v710_v33  ;;  %v1098_v38 = vpop.f32.mrb[9].mxu0  ;;  %v1103_v39 = vpop.f32.mrb[9].mxu1 }
 0x823   :  { %816 = vst.msk [vmem:[#allocation9] sm:$0x1] %vm815_vm10, %v812_v36  ;;  %919 = vst.msk [vmem:[#allocation9 + $0x1] sm:$0x1] %vm815_vm10, %v916_v37 }
 0x824   :  { %1258 = shalt.err (!%p1255_p0)
}
 0x825   :  { %s1259_s18 = scalar_lea.hbm %s1469_s5, 32 }
 0x826   :  { %p1260_p1 = scmp.ne.s32.totalorder %s1469_s5, %s1259_s18  ;;  %p1263_p2 = scmp.lt.u32.totalorder %s1259_s18, %s1469_s5 }
 0x828   :  { %p1265_p3 = pnand %p1263_p2, %p1260_p1 }
 0x82a   :  { %1268 = shalt.err (!%p1265_p3)
}
 0x82b   :  { %929 = dma.vmem_to_hbm [thread:$0]  %s927_s15, 32, %s1469_s5, [#allocation6]  }
 0x82c   :  { %1273 = dma.done.wait [#allocation6], 32  }
 0x82d   :  { %1274 = vsyncadd [#allocation6], 4294967264 }
 0x82e   :  { %1275 = dma.done.wait [#allocation11], 32  }
 0x82f   :  { %1276 = vsyncadd [#allocation11], 4294967264 }
 0x830   :  { %946 = vsyncpa [#allocation5], 1 }
 0x831   :  { %947 = vsyncpa [#allocation8], 1 }
 0x832   :  { %948 = vsyncpa [#allocation6], 1 }
 0x833   :  { %949 = vsyncpa [#allocation11], 1 }

</bundles_post_ra>
